<compile_context>
chip_gen: v7x
topology: tpu7x:2x2x1
jax: 0.10.0
libtpu: 0.0.40
codegen_flags: <defaults>
</compile_context>

<pallas_src>
import jax
import jax.numpy as jnp
from jax import lax
from jax.experimental import pallas as pl
from jax.experimental.pallas import tpu as pltpu

# Small, TPU-friendly hyper-params implied by the module's forward.
BS = 2            # bs
SEQ_LEN = 8       # seq_len
HIDDEN = 128      # hidden (lane-aligned)
N_CHARS = 8       # n_chars
NOISE_DIM = 128   # fc1 input features (fixed to 128 in the module)
KW = 5            # ResBlock conv kernel size
PAD = 2           # ResBlock conv padding
TAU = 0.5
RES_SCALE = 0.3
M = BS * SEQ_LEN  # fused row count (batch folded into the sublane axis)
C_PAD = 128       # lane-dense logits / output width

# Sublane offsets of the four weights inside the single concatenated bf16 weight slab.
OFF_W1 = 0
OFF_WA = OFF_W1 + SEQ_LEN * NOISE_DIM   # 1024
OFF_WB = OFF_WA + KW * HIDDEN           # 1664
OFF_W3 = OFF_WB + KW * HIDDEN           # 2304
W_ROWS = OFF_W3 + HIDDEN                # 2432


def generator_kernel(noise_ref, wcat_ref, baux_ref, gadd_ref, out_ref):
    L, H = SEQ_LEN, HIDDEN

    # Shared constants (hoisted once: JAX does not CSE broadcast_in_dim).
    sidx = lax.broadcasted_iota(jnp.int32, (L, H), 0)          # row index s within a batch
    zeros_lh = jnp.zeros((L, H), jnp.float32)

    # ---- fc1: build the block-diagonal (M, L*128) operand in-register from raw noise ----
    # Row b*L+s carries noise[b] in lane block s and zeros elsewhere, so the fc1 output is
    # already in (bs*seq_len, hidden) row order with no lane->sublane relayout.
    nz_rows = []
    for b in range(BS):
        nb = jnp.broadcast_to(noise_ref[b:b + 1, :], (L, NOISE_DIM))        # (8,128) f32
        blocks = [jnp.where(sidx == s, nb, zeros_lh) for s in range(L)]
        nz_rows.append(jnp.concatenate(blocks, axis=-1))                    # (8, L*128)
    nz = jnp.concatenate(nz_rows, axis=0).astype(jnp.bfloat16)              # (M, L*128)

    x = jnp.dot(nz, wcat_ref[OFF_W1:OFF_WA, :],
                preferred_element_type=jnp.float32) + baux_ref[0:M, :]      # (M, H) f32

    # ---- Conv1d(k=5, padding=2) as ONE matmul with K = 5H ----
    # Taps built per batch from a single (8,128) vreg via XLU sublane rolls + constant edge
    # masks; no padded VMEM scratch round trip.
    tap_mask = {k: ((sidx + (k - PAD) >= 0) & (sidx + (k - PAD) < L))
                for k in range(KW) if k != PAD}

    def conv5(v, w, bias):
        rows = []
        for b in range(BS):
            vb = v[b * L:(b + 1) * L, :]                        # (8, 128): one f32 vreg tile
            taps = []
            for k in range(KW):
                d = k - PAD
                if d == 0:
                    taps.append(vb)
                else:
                    rolled = pltpu.roll(vb, (-d) % L, 0)        # tap[s] = vb[s + d] (cyclic)
                    taps.append(jnp.where(tap_mask[k], rolled, zeros_lh))
            rows.append(jnp.concatenate(taps, axis=-1))         # (8, 5H)
        cat = jnp.concatenate(rows, axis=0).astype(jnp.bfloat16)             # (M, 5H)
        return jnp.dot(cat, w, preferred_element_type=jnp.float32) + bias    # (M, H) f32

    wa = wcat_ref[OFF_WA:OFF_WB, :]
    wb = wcat_ref[OFF_WB:OFF_W3, :]

    # ---- ResBlock: x + 0.3 * conv(relu(conv(relu(x)))) ----
    c1 = conv5(jnp.maximum(x, 0.0), wa, baux_ref[M:M + 1, :])
    c2 = conv5(jnp.maximum(c1, 0.0), wb, baux_ref[M + 1:M + 2, :])
    y = x + RES_SCALE * c2

    # ---- conv1 (kernel_size=1) == pointwise matmul, lane-padded to 128 output channels ----
    logits = jnp.dot(y.astype(jnp.bfloat16), wcat_ref[OFF_W3:W_ROWS, :],
                     preferred_element_type=jnp.float32) + baux_ref[M + 2:M + 3, :]

    # ---- gumbel softmax (tau=0.5): gadd = gumbel noise on real lanes, -1e9 on pad lanes ----
    z = (logits + gadd_ref[...]) * (1.0 / TAU)
    z = z - jnp.max(z, axis=-1, keepdims=True)
    e = jnp.exp(z)
    p = e * pl.reciprocal(jnp.sum(e, axis=-1, keepdims=True), approx=True)
    out_ref[...] = p.astype(out_ref.dtype)


def generator_forward(noise, kparams, gumbel):
    """noise: (bs, 128) f32.  gumbel: (bs, seq_len, n_chars) pre-sampled Gumbel(0,1)."""
    wcat, baux = kparams
    # Gumbel noise on the real logit lanes, -1e9 on the padded lanes (kills them in softmax).
    gadd = jnp.concatenate(
        [gumbel.reshape(M, N_CHARS).astype(jnp.float32),
         jnp.full((M, C_PAD - N_CHARS), -1e9, jnp.float32)], axis=-1)
    # TODO(synk): for large sampling batches, add a 1-D "parallel" grid over row tiles with
    # constant-index weight BlockSpecs so the ~600 KiB weight DMA (and on v7x the second
    # TensorCore) is amortized over many more rows per call.
    out = pl.pallas_call(
        generator_kernel,
        out_shape=jax.ShapeDtypeStruct((M, C_PAD), jnp.float32),
    )(noise.astype(jnp.float32), wcat, baux, gadd)
    return out[:, :N_CHARS].reshape(BS, SEQ_LEN, N_CHARS)


def convert_params(W_fc, b_fc, Wc1_t, bc1_t, Wc2_t, bc2_t, Wc3_t, bc3_t):
    """PyTorch-layout params -> one bf16 weight slab + one f32 bias slab (layout plumbing)."""
    H, L, C = HIDDEN, SEQ_LEN, N_CHARS
    # fc1: torch output index j = h*L + s ; block-diag operand wants row s*128+i, col h.
    w1blk = jnp.transpose(W_fc.reshape(H, L, NOISE_DIM), (1, 2, 0)).reshape(L * NOISE_DIM, H)
    # Conv1d(k=5) weights (out,in,k) -> tap-stacked (5H, H): row k*H+i, col o.
    wstk1 = jnp.transpose(Wc1_t, (2, 1, 0)).reshape(KW * H, H)
    wstk2 = jnp.transpose(Wc2_t, (2, 1, 0)).reshape(KW * H, H)
    # conv1 (k=1): (C,H,1) -> (H,C), zero-padded to 128 lane-dense output channels.
    wc3p = jnp.pad(Wc3_t[:, :, 0].T, ((0, 0), (0, C_PAD - C)))
    wcat = jnp.concatenate([w1blk, wstk1, wstk2, wc3p], axis=0).astype(jnp.bfloat16)

    bias_x = jnp.tile(b_fc.reshape(H, L).T, (BS, 1))            # (M, H), row = b*L+s
    baux = jnp.concatenate(
        [bias_x, bc1_t.reshape(1, H), bc2_t.reshape(1, H),
         jnp.pad(bc3_t, (0, C_PAD - C)).reshape(1, C_PAD)], axis=0).astype(jnp.float32)
    return wcat, baux


if __name__ == "__main__":
    H, L, C, bs = HIDDEN, SEQ_LEN, N_CHARS, BS
    key = jax.random.PRNGKey(0)
    keys = jax.random.split(key, 10)

    # ---- PyTorch-layout parameters, deterministic init ----
    W_fc = jax.random.normal(keys[0], (H * L, NOISE_DIM), jnp.float32) / jnp.sqrt(float(NOISE_DIM))
    b_fc = 0.1 * jax.random.normal(keys[1], (H * L,), jnp.float32)
    Wc1_t = jax.random.normal(keys[2], (H, H, KW), jnp.float32) / jnp.sqrt(float(KW * H))
    bc1_t = 0.1 * jax.random.normal(keys[3], (H,), jnp.float32)
    Wc2_t = jax.random.normal(keys[4], (H, H, KW), jnp.float32) / jnp.sqrt(float(KW * H))
    bc2_t = 0.1 * jax.random.normal(keys[5], (H,), jnp.float32)
    Wc3_t = jax.random.normal(keys[6], (C, H, 1), jnp.float32) / jnp.sqrt(float(H))
    bc3_t = 0.1 * jax.random.normal(keys[7], (C,), jnp.float32)

    noise = jax.random.normal(keys[8], (bs, NOISE_DIM), jnp.float32)
    # Gumbel noise sampled in plain JAX (glue) so the kernel stays deterministic/testable.
    # TODO(synk): optionally generate it in-kernel with pltpu.prng_seed/prng_random_bits.
    gumbel = jax.random.gumbel(keys[9], (bs, L, C), dtype=jnp.float32)

    kparams = convert_params(W_fc, b_fc, Wc1_t, bc1_t, Wc2_t, bc2_t, Wc3_t, bc3_t)
    out = jax.block_until_ready(generator_forward(noise, kparams, gumbel))

    # ---- pure-JAX f32 reference with exact PyTorch NCL semantics ----
    def conv1d_ref(v, w, b, pad):
        Kk = w.shape[2]
        Lout = v.shape[2]
        vp = jnp.pad(v, ((0, 0), (0, 0), (pad, pad)))
        o = jnp.zeros((v.shape[0], w.shape[0], Lout), jnp.float32) + b[None, :, None]
        for k in range(Kk):
            o = o + jnp.einsum('bil,oi->bol', vp[:, :, k:k + Lout], w[:, :, k],
                               precision=lax.Precision.HIGHEST)
        return o

    fc = jnp.dot(noise, W_fc.T, precision=lax.Precision.HIGHEST) + b_fc
    xr = fc.reshape(bs, H, L)                                   # .view(-1, hidden, seq_len)
    h1 = conv1d_ref(jnp.maximum(xr, 0.0), Wc1_t, bc1_t, PAD)
    h2 = conv1d_ref(jnp.maximum(h1, 0.0), Wc2_t, bc2_t, PAD)
    yr = xr + RES_SCALE * h2
    logits = conv1d_ref(yr, Wc3_t, bc3_t, 0)                    # (bs, n_chars, seq_len)
    logits = jnp.transpose(logits, (0, 2, 1)).reshape(bs * L, C)
    ref = jax.nn.softmax((logits + gumbel.reshape(bs * L, C)) / TAU, axis=-1).reshape(bs, L, C)

    assert out.shape == (bs, L, C)
    # bf16 weights / bf16 dot inputs vs. the full-f32 reference -> slightly relaxed tolerance.
    assert bool(jnp.allclose(out, ref, atol=3e-2, rtol=5e-2)), \
        f"max abs diff {float(jnp.max(jnp.abs(out - ref)))}"
    print("KERNEL_OK")
</pallas_src>

<mosaic_0001>
module attributes {stable_mosaic.version = 11 : i64} {
  func.func @generator_kernel(%arg0: memref<2x128xf32, #tpu.memory_space<vmem>>, %arg1: memref<2432x128xbf16, #tpu.memory_space<vmem>>, %arg2: memref<19x128xf32, #tpu.memory_space<vmem>>, %arg3: memref<16x128xf32, #tpu.memory_space<vmem>>, %arg4: memref<16x128xf32, #tpu.memory_space<vmem>>) attributes {dimension_semantics = [], scalar_prefetch = 0 : i64, scratch_operands = 0 : i64, tpu.core_type = #tpu.core_type<tc>} {
    %0 = tpu.iota {dimensions = array<i32: 0>} : vector<8x128xi32>
    %cst = arith.constant 0.000000e+00 : f32
    %1 = vector.broadcast %cst : f32 to vector<8x128xf32>
    %c0 = arith.constant 0 : index
    %c0_0 = arith.constant 0 : index
    %2 = vector.load %arg0[%c0, %c0_0] : memref<2x128xf32, #tpu.memory_space<vmem>>, vector<1x128xf32>
    %3 = vector.shape_cast %2 : vector<1x128xf32> to vector<1x128xf32>
    %4 = vector.broadcast %3 : vector<1x128xf32> to vector<8x128xf32>
    %c0_i32 = arith.constant 0 : i32
    %5 = vector.broadcast %c0_i32 : i32 to vector<8x128xi32>
    %6 = arith.cmpi eq, %0, %5 : vector<8x128xi32>
    %7 = arith.select %6, %4, %1 : vector<8x128xi1>, vector<8x128xf32>
    %c1_i32 = arith.constant 1 : i32
    %8 = vector.broadcast %c1_i32 : i32 to vector<8x128xi32>
    %9 = arith.cmpi eq, %0, %8 : vector<8x128xi32>
    %10 = arith.select %9, %4, %1 : vector<8x128xi1>, vector<8x128xf32>
    %c2_i32 = arith.constant 2 : i32
    %11 = vector.broadcast %c2_i32 : i32 to vector<8x128xi32>
    %12 = arith.cmpi eq, %0, %11 : vector<8x128xi32>
    %13 = arith.select %12, %4, %1 : vector<8x128xi1>, vector<8x128xf32>
    %c3_i32 = arith.constant 3 : i32
    %14 = vector.broadcast %c3_i32 : i32 to vector<8x128xi32>
    %15 = arith.cmpi eq, %0, %14 : vector<8x128xi32>
    %16 = arith.select %15, %4, %1 : vector<8x128xi1>, vector<8x128xf32>
    %c4_i32 = arith.constant 4 : i32
    %17 = vector.broadcast %c4_i32 : i32 to vector<8x128xi32>
    %18 = arith.cmpi eq, %0, %17 : vector<8x128xi32>
    %19 = arith.select %18, %4, %1 : vector<8x128xi1>, vector<8x128xf32>
    %c5_i32 = arith.constant 5 : i32
    %20 = vector.broadcast %c5_i32 : i32 to vector<8x128xi32>
    %21 = arith.cmpi eq, %0, %20 : vector<8x128xi32>
    %22 = arith.select %21, %4, %1 : vector<8x128xi1>, vector<8x128xf32>
    %c6_i32 = arith.constant 6 : i32
    %23 = vector.broadcast %c6_i32 : i32 to vector<8x128xi32>
    %24 = arith.cmpi eq, %0, %23 : vector<8x128xi32>
    %25 = arith.select %24, %4, %1 : vector<8x128xi1>, vector<8x128xf32>
    %c7_i32 = arith.constant 7 : i32
    %26 = vector.broadcast %c7_i32 : i32 to vector<8x128xi32>
    %27 = arith.cmpi eq, %0, %26 : vector<8x128xi32>
    %28 = arith.select %27, %4, %1 : vector<8x128xi1>, vector<8x128xf32>
    %29 = tpu.concatenate %7, %10, %13, %16, %19, %22, %25, %28 in 1 : vector<8x128xf32>, vector<8x128xf32>, vector<8x128xf32>, vector<8x128xf32>, vector<8x128xf32>, vector<8x128xf32>, vector<8x128xf32>, vector<8x128xf32> -> vector<8x1024xf32>
    %c1 = arith.constant 1 : index
    %c0_1 = arith.constant 0 : index
    %30 = vector.load %arg0[%c1, %c0_1] : memref<2x128xf32, #tpu.memory_space<vmem>>, vector<1x128xf32>
    %31 = vector.shape_cast %30 : vector<1x128xf32> to vector<1x128xf32>
    %32 = vector.broadcast %31 : vector<1x128xf32> to vector<8x128xf32>
    %c0_i32_2 = arith.constant 0 : i32
    %33 = vector.broadcast %c0_i32_2 : i32 to vector<8x128xi32>
    %34 = arith.cmpi eq, %0, %33 : vector<8x128xi32>
    %35 = arith.select %34, %32, %1 : vector<8x128xi1>, vector<8x128xf32>
    %c1_i32_3 = arith.constant 1 : i32
    %36 = vector.broadcast %c1_i32_3 : i32 to vector<8x128xi32>
    %37 = arith.cmpi eq, %0, %36 : vector<8x128xi32>
    %38 = arith.select %37, %32, %1 : vector<8x128xi1>, vector<8x128xf32>
    %c2_i32_4 = arith.constant 2 : i32
    %39 = vector.broadcast %c2_i32_4 : i32 to vector<8x128xi32>
    %40 = arith.cmpi eq, %0, %39 : vector<8x128xi32>
    %41 = arith.select %40, %32, %1 : vector<8x128xi1>, vector<8x128xf32>
    %c3_i32_5 = arith.constant 3 : i32
    %42 = vector.broadcast %c3_i32_5 : i32 to vector<8x128xi32>
    %43 = arith.cmpi eq, %0, %42 : vector<8x128xi32>
    %44 = arith.select %43, %32, %1 : vector<8x128xi1>, vector<8x128xf32>
    %c4_i32_6 = arith.constant 4 : i32
    %45 = vector.broadcast %c4_i32_6 : i32 to vector<8x128xi32>
    %46 = arith.cmpi eq, %0, %45 : vector<8x128xi32>
    %47 = arith.select %46, %32, %1 : vector<8x128xi1>, vector<8x128xf32>
    %c5_i32_7 = arith.constant 5 : i32
    %48 = vector.broadcast %c5_i32_7 : i32 to vector<8x128xi32>
    %49 = arith.cmpi eq, %0, %48 : vector<8x128xi32>
    %50 = arith.select %49, %32, %1 : vector<8x128xi1>, vector<8x128xf32>
    %c6_i32_8 = arith.constant 6 : i32
    %51 = vector.broadcast %c6_i32_8 : i32 to vector<8x128xi32>
    %52 = arith.cmpi eq, %0, %51 : vector<8x128xi32>
    %53 = arith.select %52, %32, %1 : vector<8x128xi1>, vector<8x128xf32>
    %c7_i32_9 = arith.constant 7 : i32
    %54 = vector.broadcast %c7_i32_9 : i32 to vector<8x128xi32>
    %55 = arith.cmpi eq, %0, %54 : vector<8x128xi32>
    %56 = arith.select %55, %32, %1 : vector<8x128xi1>, vector<8x128xf32>
    %57 = tpu.concatenate %35, %38, %41, %44, %47, %50, %53, %56 in 1 : vector<8x128xf32>, vector<8x128xf32>, vector<8x128xf32>, vector<8x128xf32>, vector<8x128xf32>, vector<8x128xf32>, vector<8x128xf32>, vector<8x128xf32> -> vector<8x1024xf32>
    %58 = tpu.concatenate %29, %57 in 0 : vector<8x1024xf32>, vector<8x1024xf32> -> vector<16x1024xf32>
    %59 = arith.truncf %58 : vector<16x1024xf32> to vector<16x1024xbf16>
    %c0_10 = arith.constant 0 : index
    %c0_11 = arith.constant 0 : index
    %60 = vector.load %arg1[%c0_10, %c0_11] : memref<2432x128xbf16, #tpu.memory_space<vmem>>, vector<1024x128xbf16>
    %cst_12 = arith.constant dense<0.000000e+00> : vector<16x128xf32>
    %61 = tpu.matmul %59, %60, %cst_12 {dimension_numbers = #tpu.dot_dimension_numbers<[1], [0], [0], [1], [0, 0, 1, 1], [], []>} : vector<16x1024xbf16>, vector<1024x128xbf16>, vector<16x128xf32> -> vector<16x128xf32>
    %c0_13 = arith.constant 0 : index
    %c0_14 = arith.constant 0 : index
    %62 = vector.load %arg2[%c0_13, %c0_14] : memref<19x128xf32, #tpu.memory_space<vmem>>, vector<16x128xf32>
    %63 = arith.addf %61, %62 : vector<16x128xf32>
    %c-2_i32 = arith.constant -2 : i32
    %64 = vector.broadcast %c-2_i32 : i32 to vector<8x128xi32>
    %65 = arith.addi %0, %64 : vector<8x128xi32>
    %c0_i32_15 = arith.constant 0 : i32
    %66 = vector.broadcast %c0_i32_15 : i32 to vector<8x128xi32>
    %67 = arith.cmpi sge, %65, %66 : vector<8x128xi32>
    %c-2_i32_16 = arith.constant -2 : i32
    %68 = vector.broadcast %c-2_i32_16 : i32 to vector<8x128xi32>
    %69 = arith.addi %0, %68 : vector<8x128xi32>
    %c8_i32 = arith.constant 8 : i32
    %70 = vector.broadcast %c8_i32 : i32 to vector<8x128xi32>
    %71 = arith.cmpi slt, %69, %70 : vector<8x128xi32>
    %72 = arith.andi %67, %71 : vector<8x128xi1>
    %c-1_i32 = arith.constant -1 : i32
    %73 = vector.broadcast %c-1_i32 : i32 to vector<8x128xi32>
    %74 = arith.addi %0, %73 : vector<8x128xi32>
    %c0_i32_17 = arith.constant 0 : i32
    %75 = vector.broadcast %c0_i32_17 : i32 to vector<8x128xi32>
    %76 = arith.cmpi sge, %74, %75 : vector<8x128xi32>
    %c-1_i32_18 = arith.constant -1 : i32
    %77 = vector.broadcast %c-1_i32_18 : i32 to vector<8x128xi32>
    %78 = arith.addi %0, %77 : vector<8x128xi32>
    %c8_i32_19 = arith.constant 8 : i32
    %79 = vector.broadcast %c8_i32_19 : i32 to vector<8x128xi32>
    %80 = arith.cmpi slt, %78, %79 : vector<8x128xi32>
    %81 = arith.andi %76, %80 : vector<8x128xi1>
    %c1_i32_20 = arith.constant 1 : i32
    %82 = vector.broadcast %c1_i32_20 : i32 to vector<8x128xi32>
    %83 = arith.addi %0, %82 : vector<8x128xi32>
    %c0_i32_21 = arith.constant 0 : i32
    %84 = vector.broadcast %c0_i32_21 : i32 to vector<8x128xi32>
    %85 = arith.cmpi sge, %83, %84 : vector<8x128xi32>
    %c1_i32_22 = arith.constant 1 : i32
    %86 = vector.broadcast %c1_i32_22 : i32 to vector<8x128xi32>
    %87 = arith.addi %0, %86 : vector<8x128xi32>
    %c8_i32_23 = arith.constant 8 : i32
    %88 = vector.broadcast %c8_i32_23 : i32 to vector<8x128xi32>
    %89 = arith.cmpi slt, %87, %88 : vector<8x128xi32>
    %90 = arith.andi %85, %89 : vector<8x128xi1>
    %c2_i32_24 = arith.constant 2 : i32
    %91 = vector.broadcast %c2_i32_24 : i32 to vector<8x128xi32>
    %92 = arith.addi %0, %91 : vector<8x128xi32>
    %c0_i32_25 = arith.constant 0 : i32
    %93 = vector.broadcast %c0_i32_25 : i32 to vector<8x128xi32>
    %94 = arith.cmpi sge, %92, %93 : vector<8x128xi32>
    %c2_i32_26 = arith.constant 2 : i32
    %95 = vector.broadcast %c2_i32_26 : i32 to vector<8x128xi32>
    %96 = arith.addi %0, %95 : vector<8x128xi32>
    %c8_i32_27 = arith.constant 8 : i32
    %97 = vector.broadcast %c8_i32_27 : i32 to vector<8x128xi32>
    %98 = arith.cmpi slt, %96, %97 : vector<8x128xi32>
    %99 = arith.andi %94, %98 : vector<8x128xi1>
    %c1024 = arith.constant 1024 : index
    %c0_28 = arith.constant 0 : index
    %100 = vector.load %arg1[%c1024, %c0_28] : memref<2432x128xbf16, #tpu.memory_space<vmem>>, vector<640x128xbf16>
    %c1664 = arith.constant 1664 : index
    %c0_29 = arith.constant 0 : index
    %101 = vector.load %arg1[%c1664, %c0_29] : memref<2432x128xbf16, #tpu.memory_space<vmem>>, vector<640x128xbf16>
    %cst_30 = arith.constant 0.000000e+00 : f32
    %102 = vector.broadcast %cst_30 : f32 to vector<16x128xf32>
    %103 = arith.maximumf %63, %102 : vector<16x128xf32>
    %c16 = arith.constant 16 : index
    %c0_31 = arith.constant 0 : index
    %104 = vector.load %arg2[%c16, %c0_31] : memref<19x128xf32, #tpu.memory_space<vmem>>, vector<1x128xf32>
    %105 = vector.extract_strided_slice %103 {offsets = [0, 0], sizes = [8, 128], strides = [1, 1]} : vector<16x128xf32> to vector<8x128xf32>
    %c2_i32_32 = arith.constant 2 : i32
    %106 = tpu.dynamic_rotate %105 by %c2_i32_32 dim 0 : vector<8x128xf32>, i32 -> vector<8x128xf32>
    %107 = arith.select %72, %106, %1 : vector<8x128xi1>, vector<8x128xf32>
    %c1_i32_33 = arith.constant 1 : i32
    %108 = tpu.dynamic_rotate %105 by %c1_i32_33 dim 0 : vector<8x128xf32>, i32 -> vector<8x128xf32>
    %109 = arith.select %81, %108, %1 : vector<8x128xi1>, vector<8x128xf32>
    %c7_i32_34 = arith.constant 7 : i32
    %110 = tpu.dynamic_rotate %105 by %c7_i32_34 dim 0 : vector<8x128xf32>, i32 -> vector<8x128xf32>
    %111 = arith.select %90, %110, %1 : vector<8x128xi1>, vector<8x128xf32>
    %c6_i32_35 = arith.constant 6 : i32
    %112 = tpu.dynamic_rotate %105 by %c6_i32_35 dim 0 : vector<8x128xf32>, i32 -> vector<8x128xf32>
    %113 = arith.select %99, %112, %1 : vector<8x128xi1>, vector<8x128xf32>
    %114 = tpu.concatenate %107, %109, %105, %111, %113 in 1 : vector<8x128xf32>, vector<8x128xf32>, vector<8x128xf32>, vector<8x128xf32>, vector<8x128xf32> -> vector<8x640xf32>
    %115 = vector.extract_strided_slice %103 {offsets = [8, 0], sizes = [8, 128], strides = [1, 1]} : vector<16x128xf32> to vector<8x128xf32>
    %c2_i32_36 = arith.constant 2 : i32
    %116 = tpu.dynamic_rotate %115 by %c2_i32_36 dim 0 : vector<8x128xf32>, i32 -> vector<8x128xf32>
    %117 = arith.select %72, %116, %1 : vector<8x128xi1>, vector<8x128xf32>
    %c1_i32_37 = arith.constant 1 : i32
    %118 = tpu.dynamic_rotate %115 by %c1_i32_37 dim 0 : vector<8x128xf32>, i32 -> vector<8x128xf32>
    %119 = arith.select %81, %118, %1 : vector<8x128xi1>, vector<8x128xf32>
    %c7_i32_38 = arith.constant 7 : i32
    %120 = tpu.dynamic_rotate %115 by %c7_i32_38 dim 0 : vector<8x128xf32>, i32 -> vector<8x128xf32>
    %121 = arith.select %90, %120, %1 : vector<8x128xi1>, vector<8x128xf32>
    %c6_i32_39 = arith.constant 6 : i32
    %122 = tpu.dynamic_rotate %115 by %c6_i32_39 dim 0 : vector<8x128xf32>, i32 -> vector<8x128xf32>
    %123 = arith.select %99, %122, %1 : vector<8x128xi1>, vector<8x128xf32>
    %124 = tpu.concatenate %117, %119, %115, %121, %123 in 1 : vector<8x128xf32>, vector<8x128xf32>, vector<8x128xf32>, vector<8x128xf32>, vector<8x128xf32> -> vector<8x640xf32>
    %125 = tpu.concatenate %114, %124 in 0 : vector<8x640xf32>, vector<8x640xf32> -> vector<16x640xf32>
    %126 = arith.truncf %125 : vector<16x640xf32> to vector<16x640xbf16>
    %cst_40 = arith.constant dense<0.000000e+00> : vector<16x128xf32>
    %127 = tpu.matmul %126, %100, %cst_40 {dimension_numbers = #tpu.dot_dimension_numbers<[1], [0], [0], [1], [0, 0, 1, 1], [], []>} : vector<16x640xbf16>, vector<640x128xbf16>, vector<16x128xf32> -> vector<16x128xf32>
    %128 = vector.broadcast %104 : vector<1x128xf32> to vector<16x128xf32>
    %129 = arith.addf %127, %128 : vector<16x128xf32>
    %cst_41 = arith.constant 0.000000e+00 : f32
    %130 = vector.broadcast %cst_41 : f32 to vector<16x128xf32>
    %131 = arith.maximumf %129, %130 : vector<16x128xf32>
    %c17 = arith.constant 17 : index
    %c0_42 = arith.constant 0 : index
    %132 = vector.load %arg2[%c17, %c0_42] : memref<19x128xf32, #tpu.memory_space<vmem>>, vector<1x128xf32>
    %133 = vector.extract_strided_slice %131 {offsets = [0, 0], sizes = [8, 128], strides = [1, 1]} : vector<16x128xf32> to vector<8x128xf32>
    %c2_i32_43 = arith.constant 2 : i32
    %134 = tpu.dynamic_rotate %133 by %c2_i32_43 dim 0 : vector<8x128xf32>, i32 -> vector<8x128xf32>
    %135 = arith.select %72, %134, %1 : vector<8x128xi1>, vector<8x128xf32>
    %c1_i32_44 = arith.constant 1 : i32
    %136 = tpu.dynamic_rotate %133 by %c1_i32_44 dim 0 : vector<8x128xf32>, i32 -> vector<8x128xf32>
    %137 = arith.select %81, %136, %1 : vector<8x128xi1>, vector<8x128xf32>
    %c7_i32_45 = arith.constant 7 : i32
    %138 = tpu.dynamic_rotate %133 by %c7_i32_45 dim 0 : vector<8x128xf32>, i32 -> vector<8x128xf32>
    %139 = arith.select %90, %138, %1 : vector<8x128xi1>, vector<8x128xf32>
    %c6_i32_46 = arith.constant 6 : i32
    %140 = tpu.dynamic_rotate %133 by %c6_i32_46 dim 0 : vector<8x128xf32>, i32 -> vector<8x128xf32>
    %141 = arith.select %99, %140, %1 : vector<8x128xi1>, vector<8x128xf32>
    %142 = tpu.concatenate %135, %137, %133, %139, %141 in 1 : vector<8x128xf32>, vector<8x128xf32>, vector<8x128xf32>, vector<8x128xf32>, vector<8x128xf32> -> vector<8x640xf32>
    %143 = vector.extract_strided_slice %131 {offsets = [8, 0], sizes = [8, 128], strides = [1, 1]} : vector<16x128xf32> to vector<8x128xf32>
    %c2_i32_47 = arith.constant 2 : i32
    %144 = tpu.dynamic_rotate %143 by %c2_i32_47 dim 0 : vector<8x128xf32>, i32 -> vector<8x128xf32>
    %145 = arith.select %72, %144, %1 : vector<8x128xi1>, vector<8x128xf32>
    %c1_i32_48 = arith.constant 1 : i32
    %146 = tpu.dynamic_rotate %143 by %c1_i32_48 dim 0 : vector<8x128xf32>, i32 -> vector<8x128xf32>
    %147 = arith.select %81, %146, %1 : vector<8x128xi1>, vector<8x128xf32>
    %c7_i32_49 = arith.constant 7 : i32
    %148 = tpu.dynamic_rotate %143 by %c7_i32_49 dim 0 : vector<8x128xf32>, i32 -> vector<8x128xf32>
    %149 = arith.select %90, %148, %1 : vector<8x128xi1>, vector<8x128xf32>
    %c6_i32_50 = arith.constant 6 : i32
    %150 = tpu.dynamic_rotate %143 by %c6_i32_50 dim 0 : vector<8x128xf32>, i32 -> vector<8x128xf32>
    %151 = arith.select %99, %150, %1 : vector<8x128xi1>, vector<8x128xf32>
    %152 = tpu.concatenate %145, %147, %143, %149, %151 in 1 : vector<8x128xf32>, vector<8x128xf32>, vector<8x128xf32>, vector<8x128xf32>, vector<8x128xf32> -> vector<8x640xf32>
    %153 = tpu.concatenate %142, %152 in 0 : vector<8x640xf32>, vector<8x640xf32> -> vector<16x640xf32>
    %154 = arith.truncf %153 : vector<16x640xf32> to vector<16x640xbf16>
    %cst_51 = arith.constant dense<0.000000e+00> : vector<16x128xf32>
    %155 = tpu.matmul %154, %101, %cst_51 {dimension_numbers = #tpu.dot_dimension_numbers<[1], [0], [0], [1], [0, 0, 1, 1], [], []>} : vector<16x640xbf16>, vector<640x128xbf16>, vector<16x128xf32> -> vector<16x128xf32>
    %156 = vector.broadcast %132 : vector<1x128xf32> to vector<16x128xf32>
    %157 = arith.addf %155, %156 : vector<16x128xf32>
    %cst_52 = arith.constant 3.000000e-01 : f32
    %158 = vector.broadcast %cst_52 : f32 to vector<16x128xf32>
    %159 = arith.mulf %158, %157 : vector<16x128xf32>
    %160 = arith.addf %63, %159 : vector<16x128xf32>
    %161 = arith.truncf %160 : vector<16x128xf32> to vector<16x128xbf16>
    %c2304 = arith.constant 2304 : index
    %c0_53 = arith.constant 0 : index
    %162 = vector.load %arg1[%c2304, %c0_53] : memref<2432x128xbf16, #tpu.memory_space<vmem>>, vector<128x128xbf16>
    %cst_54 = arith.constant dense<0.000000e+00> : vector<16x128xf32>
    %163 = tpu.matmul %161, %162, %cst_54 {dimension_numbers = #tpu.dot_dimension_numbers<[1], [0], [0], [1], [0, 0, 1, 1], [], []>} : vector<16x128xbf16>, vector<128x128xbf16>, vector<16x128xf32> -> vector<16x128xf32>
    %c18 = arith.constant 18 : index
    %c0_55 = arith.constant 0 : index
    %164 = vector.load %arg2[%c18, %c0_55] : memref<19x128xf32, #tpu.memory_space<vmem>>, vector<1x128xf32>
    %165 = vector.broadcast %164 : vector<1x128xf32> to vector<16x128xf32>
    %166 = arith.addf %163, %165 : vector<16x128xf32>
    %c0_56 = arith.constant 0 : index
    %c0_57 = arith.constant 0 : index
    %167 = vector.load %arg3[%c0_56, %c0_57] : memref<16x128xf32, #tpu.memory_space<vmem>>, vector<16x128xf32>
    %168 = arith.addf %166, %167 : vector<16x128xf32>
    %cst_58 = arith.constant 2.000000e+00 : f32
    %169 = vector.broadcast %cst_58 : f32 to vector<16x128xf32>
    %170 = arith.mulf %168, %169 : vector<16x128xf32>
    %cst_59 = arith.constant dense<0xFF800000> : vector<16xf32>
    %171 = vector.multi_reduction <maximumf>, %170, %cst_59 [1] : vector<16x128xf32> to vector<16xf32>
    %172 = vector.shape_cast %171 : vector<16xf32> to vector<16x1xf32>
    %173 = vector.broadcast %172 : vector<16x1xf32> to vector<16x128xf32>
    %174 = arith.subf %170, %173 : vector<16x128xf32>
    %175 = math.exp %174 : vector<16x128xf32>
    %cst_60 = arith.constant dense<0.000000e+00> : vector<16xf32>
    %176 = vector.multi_reduction <add>, %175, %cst_60 [1] : vector<16x128xf32> to vector<16xf32>
    %177 = vector.shape_cast %176 : vector<16xf32> to vector<16x1xf32>
    %178 = tpu.reciprocal %177 {approx = true} : vector<16x1xf32> -> vector<16x1xf32>
    %179 = vector.broadcast %178 : vector<16x1xf32> to vector<16x128xf32>
    %180 = arith.mulf %175, %179 : vector<16x128xf32>
    %c0_61 = arith.constant 0 : index
    %c0_62 = arith.constant 0 : index
    %181 = vector.load %arg4[%c0_61, %c0_62] : memref<16x128xf32, #tpu.memory_space<vmem>>, vector<16x128xf32>
    tpu.vector_store %arg4[%c0_61, %c0_62], %180 {strides = array<i32>} : memref<16x128xf32, #tpu.memory_space<vmem>>, vector<16x128xf32>,
    return
  }
}

</mosaic_0001>

<bundles_post_ra>
// kernel: tpu_custom_call.1
= control target key start
LH: loop header
LB: loop body
LE: loop exit
PB: predicated region body
PF: predicated region fallthrough
CT: control target
= control target key end

     0   :  { %9 = vsyncpa [#allocation3], 0  ;;  %s2880_s0 = inlined_call_operand.hbm [shape: f32[2,128], index: 0, kind: input, shape index: {}]   ;;  %s2881_s1 = inlined_call_operand.hbm [shape: bf16[2432,128], index: 1, kind: input, shape index: {}]   ;;  %s2882_s2 = inlined_call_operand.hbm [shape: f32[19,128], index: 2, kind: input, shape index: {}]   ;;  %s2883_s3 = inlined_call_operand.hbm [shape: f32[16,128], index: 3, kind: input, shape index: {}]   ;;  %s2884_s4 = inlined_call_operand.hbm [shape: f32[16,128], index: 4, kind: output, shape index: {}]  }
   0x1   :  { %10 = vsyncpa [#allocation6], 0 }
   0x2   :  { %11 = vsyncpa [#allocation9], 0 }
   0x3   :  { %12 = vsyncpa [#allocation4], 0  ;;  %s2669_s15 = smov [#allocation5]   ;;  %s2551_s19 = scalar_lea.hbm %s2881_s1, 19456 }
   0x4   :  { %s28_s16 = sshll.u32 %s2669_s15, 4  ;;  %p2552_p0 = scmp.ne.s32.totalorder %s2881_s1, %s2551_s19  ;;  %s29_s16 = int_to_ptr.vmem [resolvable:$true] %s28_s16 }
   0x5   :  { %p2555_p1 = scmp.lt.u32.totalorder %s2551_s19, %s2881_s1 }
   0x7   :  { %p2557_p2 = pnand %p2555_p1, %p2552_p0 }
   0x9   :  { %2560 = shalt.err (!%p2557_p2)
}
   0xa   :  { %s2561_s24 = scalar_lea.vmem %s29_s16, 19456  ;;  %p2566_p4 = scmp.lt.s32.totalorder %s29_s16, %s29_s16 }
   0xb   :  { %p2562_p3 = scmp.ne.s32.totalorder %s29_s16, %s2561_s24  ;;  %p2567_p5 = scmp.lt.s32.totalorder %s2561_s24, %s2561_s24 }
   0xd   :  { %p2568_p6 = por %p2567_p5, %p2566_p4 }
   0xf   :  { %p2569_p7 = pnand %p2568_p6, %p2562_p3 }
  0x11   :  { %2572 = shalt.err (!%p2569_p7)
}
  0x12   :  { %s2670_s25 = smov 64   ;;  %s2671_s26 = smov 4  }
  0x13   :  { %34 = dma.hbm_to_vmem [thread:$0]  %s2881_s1, 19456, %s29_s16, [#allocation6], %s2670_s25, %s2670_s25, %s2671_s26  }
  0x14   :  { %s2672_s29 = smov [#allocation2]   ;;  %s2673_s5 = smov [#allocation7]  }
  0x15   :  { %s19_s30 = sshll.u32 %s2672_s29, 4  ;;  %s40_s6 = sshll.u32 %s2673_s5, 4  ;;  %s20_s30 = int_to_ptr.vmem [resolvable:$true] %s19_s30  ;;  %s41_s6 = int_to_ptr.vmem [resolvable:$true] %s40_s6 }
  0x16   :  { %s2573_s9 = scalar_lea.hbm %s2880_s0, 32 }
  0x17   :  { %p2574_p8 = scmp.ne.s32.totalorder %s2880_s0, %s2573_s9  ;;  %p2577_p9 = scmp.lt.u32.totalorder %s2573_s9, %s2880_s0 }
  0x19   :  { %p2579_p10 = pnand %p2577_p9, %p2574_p8 }
  0x1b   :  { %2582 = shalt.err (!%p2579_p10)
}
  0x1c   :  { %s2583_s1 = scalar_lea.vmem %s20_s30, 32  ;;  %p2588_p12 = scmp.lt.s32.totalorder %s20_s30, %s20_s30 }
  0x1d   :  { %p2584_p11 = scmp.ne.s32.totalorder %s20_s30, %s2583_s1  ;;  %p2589_p13 = scmp.lt.s32.totalorder %s2583_s1, %s2583_s1 }
  0x1f   :  { %p2590_p0 = por %p2589_p13, %p2588_p12 }
  0x21   :  { %p2591_p1 = pnand %p2590_p0, %p2584_p11 }
  0x23   :  { %2594 = shalt.err (!%p2591_p1)
}
  0x24   :  { %22 = dma.hbm_to_vmem [thread:$0]  %s2880_s0, 32, %s20_s30, [#allocation3]  }
  0x25   :  { %s2595_s18 = scalar_lea.hbm %s2882_s2, 384 }
  0x26   :  { %p2596_p2 = scmp.ne.s32.totalorder %s2882_s2, %s2595_s18  ;;  %p2599_p3 = scmp.lt.u32.totalorder %s2595_s18, %s2882_s2 }
  0x28   :  { %p2601_p4 = pnand %p2599_p3, %p2596_p2 }
  0x2a   :  { %2604 = shalt.err (!%p2601_p4)
}
  0x2b   :  { %s2605_s23 = scalar_lea.vmem %s41_s6, 384  ;;  %p2610_p6 = scmp.lt.s32.totalorder %s41_s6, %s41_s6 }
  0x2c   :  { %p2606_p5 = scmp.ne.s32.totalorder %s41_s6, %s2605_s23  ;;  %p2611_p7 = scmp.lt.s32.totalorder %s2605_s23, %s2605_s23 }
  0x2e   :  { %p2612_p8 = por %p2611_p7, %p2610_p6 }
  0x30   :  { %p2613_p9 = pnand %p2612_p8, %p2606_p5 }
  0x32   :  { %2616 = shalt.err (!%p2613_p9)
}
  0x33   :  { %s2674_s0 = smov 128   ;;  %s2675_s24 = smov 8  }
  0x34   :  { %46 = dma.hbm_to_vmem [thread:$0]  %s2882_s2, 384, %s41_s6, [#allocation6], %s2674_s0, %s2674_s0, %s2675_s24  }
  0x35   :  { %s2676_s27 = smov [#allocation8]   ;;  %s2617_s5 = scalar_lea.hbm %s2883_s3, 256 }
  0x36   :  { %s52_s28 = sshll.u32 %s2676_s27, 4  ;;  %p2618_p10 = scmp.ne.s32.totalorder %s2883_s3, %s2617_s5  ;;  %s53_s28 = int_to_ptr.vmem [resolvable:$true] %s52_s28 }
  0x37   :  { %p2621_p11 = scmp.lt.u32.totalorder %s2617_s5, %s2883_s3 }
  0x39   :  { %p2623_p12 = pnand %p2621_p11, %p2618_p10 }
  0x3b   :  { %2626 = shalt.err (!%p2623_p12)
}
  0x3c   :  { %s2627_s11 = scalar_lea.vmem %s53_s28, 256  ;;  %p2632_p0 = scmp.lt.s32.totalorder %s53_s28, %s53_s28 }
  0x3d   :  { %p2628_p13 = scmp.ne.s32.totalorder %s53_s28, %s2627_s11  ;;  %p2633_p1 = scmp.lt.s32.totalorder %s2627_s11, %s2627_s11 }
  0x3f   :  { %p2634_p2 = por %p2633_p1, %p2632_p0 }
  0x41   :  { %p2635_p3 = pnand %p2634_p2, %p2628_p13 }
  0x43   :  { %2638 = shalt.err (!%p2635_p3)
}
  0x44   :  { %58 = dma.hbm_to_vmem [thread:$0]  %s2883_s3, 256, %s53_s28, [#allocation9], %s2674_s0, %s2674_s0, %s2675_s24  }
  0x45   :  { %2661 = dma.done.wait [#allocation3], 32  }
  0x46   :  { %2662 = vsyncadd [#allocation3], 4294967264 }
  0x47   :  { %2663 = dma.done.wait [#allocation6], 19840  }
  0x48   :  { %2664 = vsyncadd [#allocation6], 4294947456 }
  0x49   :  { %2665 = dma.done.wait [#allocation9], 256  }
  0x4a   :  { %2666 = vsyncadd [#allocation9], 4294967040  ;;  %v2391_v0 = vld [vmem:[#allocation5 + $0x40] sm:$0xff]   ;;  %v2395_v4 = vld [vmem:[#allocation5 + $0x48] sm:$0xff]   ;;  %v72_v13 = vlaneseq  ;;  %s2679_s3 = smov [#allocation10]  }
  0x4b   :  { %v2392_v1 = vld [vmem:[#allocation5 + $0xc0] sm:$0xff]   ;;  %2117 = vmatprep.subr.bf16.mxu0 %v2391_v0  ;;  %v2396_v5 = vld [vmem:[#allocation5 + $0xc8] sm:$0xff]   ;;  %v2399_v8 = vld [vmem:[#allocation5 + $0x50] sm:$0xff]   ;;  %s1898_s12 = sshll.u32 %s2679_s3, 4  ;;  %s1899_s12 = int_to_ptr.vmem [resolvable:$true] %s1898_s12 }
  0x4c   :  { %v2393_v2 = vld [vmem:[#allocation5] sm:$0xff]   ;;  %2139 = vmatprep.subr.bf16.mxu1 %v2392_v1  ;;  %v2397_v6 = vld [vmem:[#allocation5 + $0x8] sm:$0xff]   ;;  %v2400_v9 = vld [vmem:[#allocation5 + $0xd0] sm:$0xff]   ;;  %v2759_v18 = vshrl.u32 %v72_v13, 7  ;;  %s2639_s13 = scalar_lea.vmem %s1899_s12, 256  ;;  %p2644_p5 = scmp.lt.s32.totalorder %s1899_s12, %s1899_s12 }
  0x4d   :  { %v2394_v3 = vld [vmem:[#allocation5 + $0x80] sm:$0xff]   ;;  %2118 = vmatpush3.bf16.msra.mxu0 %v2393_v2  ;;  %v2398_v7 = vld [vmem:[#allocation5 + $0x88] sm:$0xff]   ;;  %v2401_v10 = vld [vmem:[#allocation5 + $0x10] sm:$0xff]   ;;  %p2640_p4 = scmp.ne.s32.totalorder %s1899_s12, %s2639_s13  ;;  %p2645_p6 = scmp.lt.s32.totalorder %s2639_s13, %s2639_s13 }
  0x4e   :  { %2140 = vmatpush3.bf16.msra.mxu1 %v2394_v3  ;;  %2119 = vmatprep.subr.bf16.mxu0 %v2395_v4  ;;  %v2402_v11 = vld [vmem:[#allocation5 + $0x90] sm:$0xff]   ;;  %v2403_v12 = vld [vmem:[#allocation5 + $0x58] sm:$0xff]   ;;  %v2407_v17 = vld [vmem:[#allocation5 + $0x60] sm:$0xff]   ;;  %vm81_vm0 = vcmp.eq.s32.totalorder %v2759_v18, 1  ;;  %vm85_vm1 = vcmp.eq.s32.totalorder %v2759_v18, 3  ;;  %vm79_vm4 = vcmp.eq.s32.totalorder %v2759_v18, 0 }
  0x4f   :  { %2141 = vmatprep.subr.bf16.mxu1 %v2396_v5  ;;  %v2404_v14 = vld [vmem:[#allocation5 + $0xd8] sm:$0xff]   ;;  %v2408_v19 = vld [vmem:[#allocation5 + $0xe0] sm:$0xff]   ;;  %v2411_v22 = vld [vmem:[#allocation5 + $0x68] sm:$0xff]   ;;  %vm83_vm5 = vcmp.eq.s32.totalorder %v2759_v18, 2  ;;  %vm89_vm8 = vcmp.eq.s32.totalorder %v2759_v18, 5  ;;  %vm93_vm9 = vcmp.eq.s32.totalorder %v2759_v18, 7  ;;  %p2646_p7 = por %p2645_p6, %p2644_p5 }
  0x50   :  { %v2405_v15 = vld [vmem:[#allocation5 + $0x18] sm:$0xff]   ;;  %v2409_v20 = vld [vmem:[#allocation5 + $0x20] sm:$0xff]   ;;  %v2412_v23 = vld [vmem:[#allocation5 + $0xe8] sm:$0xff]   ;;  %vm87_vm10 = vcmp.eq.s32.totalorder %v2759_v18, 4  ;;  %vm91_vm12 = vcmp.eq.s32.totalorder %v2759_v18, 6 }
  0x51   :  { %2120 = vmatpush3.bf16.msra.mxu0 %v2397_v6  ;;  %v2406_v16 = vld [vmem:[#allocation5 + $0x98] sm:$0xff]   ;;  %v2410_v21 = vld [vmem:[#allocation5 + $0xa0] sm:$0xff]   ;;  %v2413_v24 = vld [vmem:[#allocation5 + $0x28] sm:$0xff]   ;;  %p2647_p8 = pnand %p2646_p7, %p2640_p4 }
  0x52   :  { %2142 = vmatpush3.bf16.msra.mxu1 %v2398_v7  ;;  %2121 = vmatprep.subr.bf16.mxu0 %v2399_v8  ;;  %v2414_v25 = vld [vmem:[#allocation5 + $0xa8] sm:$0xff]   ;;  %v2415_v26 = vld [vmem:[#allocation5 + $0x70] sm:$0xff]   ;;  %vm2763_vm2 = vmpackc.low %vm81_vm0, %vm81_vm0 }
  0x53   :  { %2143 = vmatprep.subr.bf16.mxu1 %v2400_v9  ;;  %vm2767_vm3 = vmpackc.low %vm85_vm1, %vm85_vm1  ;;  %v2416_v29 = vld [vmem:[#allocation5 + $0xf0] sm:$0xff]   ;;  %v2419_v32 = vld [vmem:[#allocation5 + $0x78] sm:$0xff]  }
  0x54   :  { %v2417_v30 = vld [vmem:[#allocation5 + $0x30] sm:$0xff]   ;;  %v2420_v33 = vld [vmem:[#allocation5 + $0xf8] sm:$0xff]   ;;  %vm1981_vm6 = vmpackc.low %vm79_vm4, %vm79_vm4 }
  0x55   :  { %2122 = vmatpush3.bf16.msra.mxu0 %v2401_v10  ;;  %v2418_v31 = vld [vmem:[#allocation5 + $0xb0] sm:$0xff]   ;;  %v2421_v34 = vld [vmem:[#allocation5 + $0x38] sm:$0xff]   ;;  %vm1987_vm7 = vmpackc.low %vm83_vm5, %vm83_vm5 }
  0x56   :  { %2144 = vmatpush3.bf16.msra.mxu1 %v2402_v11  ;;  %2123 = vmatprep.subr.bf16.mxu0 %v2403_v12  ;;  %v2422_v35 = vld [vmem:[#allocation5 + $0xb8] sm:$0xff]   ;;  %v2423_v39 = vld [vmem:[#allocation5 + $0x140] sm:$0xff]   ;;  %v2427_v43 = vld [vmem:[#allocation5 + $0x148] sm:$0xff]  }
  0x57   :  { %2145 = vmatprep.subr.bf16.mxu1 %v2404_v14  ;;  %v1912_v36 = vld [vmem:[#allocation2] ss:$0 sm:$0xff]  ;;  %v1913_v37 = vld [vmem:[#allocation2 + $0x1] ss:$0 sm:$0xff]  ;;  %v2424_v40 = vld [vmem:[#allocation5 + $0x1c0] sm:$0xff]  }
  0x58   :  { %v2773_v38 = vpack.c.bf16 %v1913_v37, %v1912_v36  ;;  %v2425_v41 = vld [vmem:[#allocation5 + $0x100] sm:$0xff]   ;;  %v2428_v44 = vld [vmem:[#allocation5 + $0x1c8] sm:$0xff]   ;;  %v2431_v47 = vld [vmem:[#allocation5 + $0x150] sm:$0xff]  }
  0x59   :  { %2124 = vmatpush3.bf16.msra.mxu0 %v2405_v15  ;;  %v2426_v42 = vld [vmem:[#allocation5 + $0x180] sm:$0xff]   ;;  %v2429_v45 = vld [vmem:[#allocation5 + $0x108] sm:$0xff]   ;;  %v2432_v48 = vld [vmem:[#allocation5 + $0x1d0] sm:$0xff]  }
  0x5a   :  { %2146 = vmatpush3.bf16.msra.mxu1 %v2406_v16  ;;  %2125 = vmatprep.subr.bf16.mxu0 %v2407_v17  ;;  %v2430_v46 = vld [vmem:[#allocation5 + $0x188] sm:$0xff]   ;;  %v2433_v49 = vld [vmem:[#allocation5 + $0x110] sm:$0xff]   ;;  %v2435_v51 = vld [vmem:[#allocation5 + $0x158] sm:$0xff]  }
  0x5b   :  { %2147 = vmatprep.subr.bf16.mxu1 %v2408_v19  ;;  %1980 = vmatprep.mubr.msk.bf16.mxu0 %vm2763_vm2, %v2773_v38  ;;  %v2434_v50 = vld [vmem:[#allocation5 + $0x190] sm:$0xff]   ;;  %v2436_v52 = vld [vmem:[#allocation5 + $0x1d8] sm:$0xff]   ;;  %v2439_v55 = vld [vmem:[#allocation5 + $0x160] sm:$0xff]  }
  0x5c   :  { %1986 = vmatprep.mubr.msk.bf16.mxu1 %vm2767_vm3, %v2773_v38  ;;  %v2437_v53 = vld [vmem:[#allocation5 + $0x118] sm:$0xff]   ;;  %v2440_v56 = vld [vmem:[#allocation5 + $0x1e0] sm:$0xff]   ;;  %v2443_v59 = vld [vmem:[#allocation5 + $0x168] sm:$0xff]  }
  0x5d   :  { %2126 = vmatpush3.bf16.msra.mxu0 %v2409_v20  ;;  %v2438_v54 = vld [vmem:[#allocation5 + $0x198] sm:$0xff]   ;;  %v2441_v57 = vld [vmem:[#allocation5 + $0x120] sm:$0xff]   ;;  %v2444_v60 = vld [vmem:[#allocation5 + $0x1e8] sm:$0xff]  }
  0x5e   :  { %2148 = vmatpush3.bf16.msra.mxu1 %v2410_v21  ;;  %2127 = vmatprep.subr.bf16.mxu0 %v2411_v22  ;;  %v2442_v58 = vld [vmem:[#allocation5 + $0x1a0] sm:$0xff]   ;;  %v2445_v61 = vld [vmem:[#allocation5 + $0x128] sm:$0xff]   ;;  %v2447_v63 = vld [vmem:[#allocation5 + $0x170] sm:$0xff]  }
  0x5f   :  { %2149 = vmatprep.subr.bf16.mxu1 %v2412_v23  ;;  %v2446_v62 = vld [vmem:[#allocation5 + $0x1a8] sm:$0xff]   ;;  %v2448_v0 = vld [vmem:[#allocation5 + $0x1f0] sm:$0xff]   ;;  %v2451_v3 = vld [vmem:[#allocation5 + $0x178] sm:$0xff]  }
  0x60   :  { %v2449_v1 = vld [vmem:[#allocation5 + $0x130] sm:$0xff]   ;;  %v2452_v4 = vld [vmem:[#allocation5 + $0x1f8] sm:$0xff]   ;;  %vm1990_vm11 = vmpackc.low %vm89_vm8, %vm89_vm8 }
  0x61   :  { %2128 = vmatpush3.bf16.msra.mxu0 %v2413_v24  ;;  %v2450_v2 = vld [vmem:[#allocation5 + $0x1b0] sm:$0xff]   ;;  %v2453_v5 = vld [vmem:[#allocation5 + $0x138] sm:$0xff]   ;;  %vm1996_vm13 = vmpackc.low %vm93_vm9, %vm93_vm9 }
  0x62   :  { %2150 = vmatpush3.bf16.msra.mxu1 %v2414_v25  ;;  %2129 = vmatprep.subr.bf16.mxu0 %v2415_v26  ;;  %v2454_v6 = vld [vmem:[#allocation5 + $0x1b8] sm:$0xff]   ;;  %vm1993_vm14 = vmpackc.low %vm87_vm10, %vm87_vm10  ;;  %v2455_v7 = vld [vmem:[#allocation5 + $0x240] sm:$0xff]  }
  0x63   :  { %2151 = vmatprep.subr.bf16.mxu1 %v2416_v29  ;;  %vm1999_vm15 = vmpackc.low %vm91_vm12, %vm91_vm12  ;;  %v2456_v8 = vld [vmem:[#allocation5 + $0x200] sm:$0xff]   ;;  %v2459_v11 = vld [vmem:[#allocation5 + $0x248] sm:$0xff]  }
  0x64   :  { %v2457_v9 = vld [vmem:[#allocation5 + $0x2c0] sm:$0xff]   ;;  %v2461_v12 = vld [vmem:[#allocation5 + $0x2c8] sm:$0xff]   ;;  %v2463_v15 = vld [vmem:[#allocation5 + $0x250] sm:$0xff]  }
  0x65   :  { %2130 = vmatpush3.bf16.msra.mxu0 %v2417_v30  ;;  %v2458_v10 = vld [vmem:[#allocation5 + $0x280] sm:$0xff]   ;;  %v2460_v13 = vld [vmem:[#allocation5 + $0x208] sm:$0xff]   ;;  %v2465_v16 = vld [vmem:[#allocation5 + $0x2d0] sm:$0xff]  }
  0x66   :  { %2152 = vmatpush3.bf16.msra.mxu1 %v2418_v31  ;;  %2131 = vmatprep.subr.bf16.mxu0 %v2419_v32  ;;  %v2462_v14 = vld [vmem:[#allocation5 + $0x288] sm:$0xff]   ;;  %v2464_v17 = vld [vmem:[#allocation5 + $0x210] sm:$0xff]   ;;  %v2467_v20 = vld [vmem:[#allocation5 + $0x258] sm:$0xff]  }
  0x67   :  { %2153 = vmatprep.subr.bf16.mxu1 %v2420_v33  ;;  %v2466_v19 = vld [vmem:[#allocation5 + $0x290] sm:$0xff]   ;;  %v2469_v21 = vld [vmem:[#allocation5 + $0x2d8] sm:$0xff]   ;;  %v2471_v24 = vld [vmem:[#allocation5 + $0x260] sm:$0xff]  }
  0x68   :  { %v2468_v22 = vld [vmem:[#allocation5 + $0x218] sm:$0xff]   ;;  %v2472_v25 = vld [vmem:[#allocation5 + $0x220] sm:$0xff]   ;;  %v2475_v28 = vld [vmem:[#allocation5 + $0x268] sm:$0xff]  }
  0x69   :  { %2132 = vmatpush3.bf16.msra.mxu0 %v2421_v34  ;;  %v2470_v23 = vld [vmem:[#allocation5 + $0x298] sm:$0xff]   ;;  %v2473_v26 = vld [vmem:[#allocation5 + $0x2e0] sm:$0xff]   ;;  %v2476_v29 = vld [vmem:[#allocation5 + $0x228] sm:$0xff]  }
  0x6a   :  { %2154 = vmatpush3.bf16.msra.mxu1 %v2422_v35  ;;  %2161 = vmatprep.subr.bf16.mxu0 %v2423_v39  ;;  %v2474_v27 = vld [vmem:[#allocation5 + $0x2a0] sm:$0xff]   ;;  %v2477_v30 = vld [vmem:[#allocation5 + $0x2e8] sm:$0xff]   ;;  %v2479_v32 = vld [vmem:[#allocation5 + $0x270] sm:$0xff]  }
  0x6b   :  { %2183 = vmatprep.subr.bf16.mxu1 %v2424_v40  ;;  %v2478_v31 = vld [vmem:[#allocation5 + $0x2a8] sm:$0xff]   ;;  %v2480_v33 = vld [vmem:[#allocation5 + $0x230] sm:$0xff]   ;;  %v2483_v36 = vld [vmem:[#allocation5 + $0x278] sm:$0xff]   ;;  %v2677_v40 = vmov 0.0  }
  0x6c   :  { %1983 = vmatmul.mubr.msk.bf16.vlgmr.msra.gmra.mrb[0].mxu0 %vm1981_vm6, %v2773_v38  ;;  %v2481_v34 = vld [vmem:[#allocation5 + $0x2f0] sm:$0xff]   ;;  %v2484_v37 = vld [vmem:[#allocation5 + $0x238] sm:$0xff]   ;;  %vm2678_vm6 = vmmov 0  }
  0x6d   :  { %1989 = vmatmul.mubr.msk.bf16.vlgmr.msra.gmra.mrb[0].mxu1 %vm1987_vm7, %v2773_v38  ;;  %2162 = vmatpush3.bf16.msra.mxu0 %v2425_v41  ;;  %v2482_v35 = vld [vmem:[#allocation5 + $0x2b0] sm:$0xff]   ;;  %v2486_v39 = vld [vmem:[#allocation5 + $0x2b8] sm:$0xff]  }
  0x6e   :  { %2184 = vmatpush3.bf16.msra.mxu1 %v2426_v42  ;;  %2163 = vmatprep.subr.bf16.mxu0 %v2427_v43  ;;  %v244_v43 = vld [vmem:[#allocation7] sm:$0xff] }
  0x6f   :  { %2185 = vmatprep.subr.bf16.mxu1 %v2428_v44  ;;  %1992 = vmatprep.mubr.msk.bf16.mxu0 %vm1990_vm11, %v2773_v38 }
  0x70   :  { %1998 = vmatprep.mubr.msk.bf16.mxu1 %vm1996_vm13, %v2773_v38 }
  0x71   :  { %2164 = vmatpush3.bf16.msra.mxu0 %v2429_v45 }
  0x72   :  { %2186 = vmatpush3.bf16.msra.mxu1 %v2430_v46  ;;  %2165 = vmatprep.subr.bf16.mxu0 %v2431_v47 }
  0x73   :  { %2187 = vmatprep.subr.bf16.mxu1 %v2432_v48 }
  0x75   :  { %2166 = vmatpush3.bf16.msra.mxu0 %v2433_v49 }
  0x76   :  { %2188 = vmatpush3.bf16.msra.mxu1 %v2434_v50  ;;  %2167 = vmatprep.subr.bf16.mxu0 %v2435_v51  ;;  %v245_v50 = vld [vmem:[#allocation7 + $0x8] sm:$0xff] }
  0x77   :  { %2189 = vmatprep.subr.bf16.mxu1 %v2436_v52 }
  0x79   :  { %2168 = vmatpush3.bf16.msra.mxu0 %v2437_v53 }
  0x7a   :  { %2190 = vmatpush3.bf16.msra.mxu1 %v2438_v54  ;;  %2169 = vmatprep.subr.bf16.mxu0 %v2439_v55 }
  0x7b   :  { %2191 = vmatprep.subr.bf16.mxu1 %v2440_v56 }
  0x7d   :  { %2170 = vmatpush3.bf16.msra.mxu0 %v2441_v57 }
  0x7e   :  { %2192 = vmatpush3.bf16.msra.mxu1 %v2442_v58  ;;  %2171 = vmatprep.subr.bf16.mxu0 %v2443_v59 }
  0x7f   :  { %2193 = vmatprep.subr.bf16.mxu1 %v2444_v60 }
  0x81   :  { %2172 = vmatpush3.bf16.msra.mxu0 %v2445_v61 }
  0x82   :  { %2194 = vmatpush3.bf16.msra.mxu1 %v2446_v62  ;;  %2173 = vmatprep.subr.bf16.mxu0 %v2447_v63 }
  0x83   :  { %2195 = vmatprep.subr.bf16.mxu1 %v2448_v0 }
  0x85   :  { %2174 = vmatpush3.bf16.msra.mxu0 %v2449_v1 }
  0x86   :  { %2196 = vmatpush3.bf16.msra.mxu1 %v2450_v2  ;;  %2175 = vmatprep.subr.bf16.mxu0 %v2451_v3 }
  0x87   :  { %2197 = vmatprep.subr.bf16.mxu1 %v2452_v4 }
  0x89   :  { %2176 = vmatpush3.bf16.msra.mxu0 %v2453_v5 }
  0x8a   :  { %2198 = vmatpush3.bf16.msra.mxu1 %v2454_v6  ;;  %2205 = vmatprep.subr.bf16.mxu0 %v2455_v7 }
  0x8b   :  { %2227 = vmatprep.subr.bf16.mxu1 %v2457_v9 }
  0x8c   :  { %1995 = vmatmul.mubr.msk.bf16.vlgmr.msra.gmra.mrb[4].mxu0 %vm1993_vm14, %v2773_v38 }
  0x8d   :  { %2001 = vmatmul.mubr.msk.bf16.vlgmr.msra.gmra.mrb[4].mxu1 %vm1999_vm15, %v2773_v38  ;;  %2206 = vmatpush3.bf16.msra.mxu0 %v2456_v8  ;;  %v2485_v38 = vld [vmem:[#allocation5 + $0x2f8] sm:$0xff]   ;;  %v798_v8 = vadd.s32 4294967295, %v2759_v18 }
  0x8e   :  { %2228 = vmatpush3.bf16.msra.mxu1 %v2458_v10  ;;  %2207 = vmatprep.subr.bf16.mxu0 %v2459_v11  ;;  %v802_v11 = vadd.s32 1, %v2759_v18 }
  0x8f   :  { %2229 = vmatprep.subr.bf16.mxu1 %v2461_v12  ;;  %v794_v12 = vadd.s32 4294967294, %v2759_v18  ;;  %vm799_vm0 = vcmp.ge.s32.totalorder %v798_v8, 0  ;;  %v2524_v8 = vld [vmem:[#allocation5 + $0x378] sm:$0xff]  }
  0x90   :  { %vm804_vm1 = vcmp.lt.s32.totalorder %v802_v11, 8  ;;  %vm2801_vm3 = vmpackc.low %vm799_vm0, %vm799_vm0  ;;  %v2526_v11 = vld [vmem:[#allocation5 + $0x3f8] sm:$0xff]  }
  0x91   :  { %2208 = vmatpush3.bf16.msra.mxu0 %v2460_v13  ;;  %vm795_vm2 = vcmp.ge.s32.totalorder %v794_v12, 0  ;;  %vm2805_vm4 = vmpackc.low %vm804_vm1, %vm804_vm1 }
  0x92   :  { %2230 = vmatpush3.bf16.msra.mxu1 %v2462_v14  ;;  %2209 = vmatprep.subr.bf16.mxu0 %v2463_v15  ;;  %vm2809_vm5 = vmpackc.low %vm795_vm2, %vm795_vm2 }
  0x93   :  { %2231 = vmatprep.subr.bf16.mxu1 %v2465_v16 }
  0x95   :  { %2210 = vmatpush3.bf16.msra.mxu0 %v2464_v17 }
  0x96   :  { %2232 = vmatpush3.bf16.msra.mxu1 %v2466_v19  ;;  %2211 = vmatprep.subr.bf16.mxu0 %v2467_v20  ;;  %v2529_v20 = vld [vmem:[#allocation5 + $0x450] sm:$0xff]  }
  0x97   :  { %2233 = vmatprep.subr.bf16.mxu1 %v2469_v21 }
  0x99   :  { %2212 = vmatpush3.bf16.msra.mxu0 %v2468_v22 }
  0x9a   :  { %2234 = vmatpush3.bf16.msra.mxu1 %v2470_v23  ;;  %2213 = vmatprep.subr.bf16.mxu0 %v2471_v24  ;;  %v2530_v24 = vld [vmem:[#allocation5 + $0x458] sm:$0xff]  }
  0x9b   :  { %2235 = vmatprep.subr.bf16.mxu1 %v2473_v26 }
  0x9d   :  { %2214 = vmatpush3.bf16.msra.mxu0 %v2472_v25 }
  0x9e   :  { %2236 = vmatpush3.bf16.msra.mxu1 %v2474_v27  ;;  %2215 = vmatprep.subr.bf16.mxu0 %v2475_v28  ;;  %v2531_v27 = vld [vmem:[#allocation5 + $0x460] sm:$0xff]  }
  0x9f   :  { %2237 = vmatprep.subr.bf16.mxu1 %v2477_v30 }
  0xa1   :  { %2216 = vmatpush3.bf16.msra.mxu0 %v2476_v29  ;;  %v2487_v29 = vld [vmem:[#allocation5 + $0x300] sm:$0xff]  }
  0xa2   :  { %2238 = vmatpush3.bf16.msra.mxu1 %v2478_v31  ;;  %2217 = vmatprep.subr.bf16.mxu0 %v2479_v32  ;;  %v2488_v31 = vld [vmem:[#allocation5 + $0x308] sm:$0xff]   ;;  %v2489_v32 = vld [vmem:[#allocation5 + $0x310] sm:$0xff]  }
  0xa3   :  { %2239 = vmatprep.subr.bf16.mxu1 %v2481_v34  ;;  %v2491_v34 = vld [vmem:[#allocation5 + $0x320] sm:$0xff]  }
  0xa5   :  { %2218 = vmatpush3.bf16.msra.mxu0 %v2480_v33  ;;  %v2490_v33 = vld [vmem:[#allocation5 + $0x318] sm:$0xff]  }
  0xa6   :  { %2240 = vmatpush3.bf16.msra.mxu1 %v2482_v35  ;;  %2219 = vmatprep.subr.bf16.mxu0 %v2483_v36  ;;  %v2492_v35 = vld [vmem:[#allocation5 + $0x328] sm:$0xff]   ;;  %v2493_v36 = vld [vmem:[#allocation5 + $0x330] sm:$0xff]  }
  0xa7   :  { %2241 = vmatprep.subr.bf16.mxu1 %v2485_v38  ;;  %v2494_v38 = vld [vmem:[#allocation5 + $0x338] sm:$0xff]  }
  0xa9   :  { %2220 = vmatpush3.bf16.msra.mxu0 %v2484_v37  ;;  %v806_v37 = vadd.s32 2, %v2759_v18  ;;  %v2498_v18 = vld [vmem:[#allocation5 + $0x3c0] sm:$0xff]  }
  0xaa   :  { %2242 = vmatpush3.bf16.msra.mxu1 %v2486_v39  ;;  %2320 = vmatprep.subr.bf16.mxu0 %v2677_v40 }
  0xab   :  { %vm808_vm7 = vcmp.lt.s32.totalorder %v806_v37, 8 }
  0xac   :  { %vm2829_vm8 = vmpackc.low %vm808_vm7, %vm808_vm7 }
 0x13f   :  { %v2133_v41 = vpop.f32.mrb[0].mxu0 }
 0x140   :  { %v2155_v42 = vpop.f32.mrb[0].mxu1  ;;  %v2134_v44 = vpop.f32.mrb[1].mxu0 }
 0x141   :  { %v2156_v45 = vpop.f32.mrb[1].mxu1  ;;  %v2135_v46 = vadd.f32 %v2134_v44, %v2133_v41  ;;  %v2136_v48 = vpop.f32.mrb[2].mxu0  ;;  %v2495_v44 = vld [vmem:[#allocation5 + $0x380] sm:$0xff]  }
 0x142   :  { %v2157_v47 = vadd.f32 %v2156_v45, %v2155_v42  ;;  %v2158_v49 = vpop.f32.mrb[2].mxu1  ;;  %v2137_v51 = vpop.f32.mrb[3].mxu0  ;;  %v2496_v45 = vld [vmem:[#allocation5 + $0x340] sm:$0xff]   ;;  %2258 = vmatprep.subr.bf16.mxu1 %v2495_v44  ;;  %v2540_v42 = vld [vmem:[#allocation5 + $0x4a8] sm:$0xff]  }
 0x143   :  { %v2159_v52 = vpop.f32.mrb[3].mxu1  ;;  %v665_v53 = vadd.f32 %v2135_v46, %v244_v43  ;;  %v2138_v54 = vadd.f32 %v2137_v51, %v2136_v48  ;;  %v2497_v46 = vld [vmem:[#allocation5 + $0x400] sm:$0xff]   ;;  %v2501_v48 = vld [vmem:[#allocation5 + $0x408] sm:$0xff]   ;;  %v2503_v51 = vld [vmem:[#allocation5 + $0x390] sm:$0xff]  }
 0x144   :  { %v2160_v55 = vadd.f32 %v2159_v52, %v2158_v49  ;;  %v2500_v49 = vld [vmem:[#allocation5 + $0x348] sm:$0xff]   ;;  %v2505_v52 = vld [vmem:[#allocation5 + $0x410] sm:$0xff]  }
 0x145   :  { %v706_v56 = vadd.f32 %v2157_v47, %v665_v53  ;;  %v668_v57 = vadd.f32 %v2138_v54, %v245_v50  ;;  %v2499_v47 = vld [vmem:[#allocation5 + $0x388] sm:$0xff]   ;;  %v2504_v53 = vld [vmem:[#allocation5 + $0x350] sm:$0xff]  }
 0x146   :  { %v2502_v50 = vld [vmem:[#allocation5 + $0x3c8] sm:$0xff]   ;;  %v2506_v54 = vld [vmem:[#allocation5 + $0x3d0] sm:$0xff]  }
 0x147   :  { %v709_v58 = vadd.f32 %v2160_v55, %v668_v57  ;;  %v2507_v55 = vld [vmem:[#allocation5 + $0x398] sm:$0xff]  }
 0x148   :  { %v2508_v57 = vld [vmem:[#allocation5 + $0x358] sm:$0xff]  }
 0x15f   :  { %v2177_v59 = vpop.f32.mrb[4].mxu0 }
 0x160   :  { %v2199_v60 = vpop.f32.mrb[4].mxu1  ;;  %v2178_v61 = vpop.f32.mrb[5].mxu0 }
 0x161   :  { %v2179_v62 = vadd.f32 %v2178_v61, %v2177_v59  ;;  %v2200_v63 = vpop.f32.mrb[5].mxu1  ;;  %v2180_v0 = vpop.f32.mrb[6].mxu0  ;;  %v2511_v59 = vld [vmem:[#allocation5 + $0x3a0] sm:$0xff]  }
 0x162   :  { %v2201_v1 = vadd.f32 %v2200_v63, %v2199_v60  ;;  %v2202_v2 = vpop.f32.mrb[6].mxu1  ;;  %v2181_v3 = vpop.f32.mrb[7].mxu0  ;;  %v2513_v60 = vld [vmem:[#allocation5 + $0x420] sm:$0xff]   ;;  %v2515_v63 = vld [vmem:[#allocation5 + $0x3a8] sm:$0xff]  }
 0x163   :  { %v747_v4 = vadd.f32 %v2179_v62, %v706_v56  ;;  %v2182_v5 = vadd.f32 %v2181_v3, %v2180_v0  ;;  %v2203_v6 = vpop.f32.mrb[7].mxu1  ;;  %v2509_v56 = vld [vmem:[#allocation5 + $0x418] sm:$0xff]   ;;  %v2512_v61 = vld [vmem:[#allocation5 + $0x360] sm:$0xff]   ;;  %v2516_v0 = vld [vmem:[#allocation5 + $0x368] sm:$0xff]  }
 0x164   :  { %v2204_v7 = vadd.f32 %v2203_v6, %v2202_v2  ;;  %v2514_v62 = vld [vmem:[#allocation5 + $0x3e0] sm:$0xff]   ;;  %v2518_v2 = vld [vmem:[#allocation5 + $0x3e8] sm:$0xff]   ;;  %v2519_v3 = vld [vmem:[#allocation5 + $0x3b0] sm:$0xff]  }
 0x165   :  { %v2793_v9 = vadd.f32 %v2201_v1, %v747_v4  ;;  %v750_v10 = vadd.f32 %v2182_v5, %v709_v58  ;;  %v2510_v58 = vld [vmem:[#allocation5 + $0x3d8] sm:$0xff]   ;;  %v2517_v1 = vld [vmem:[#allocation5 + $0x428] sm:$0xff]   ;;  %v2520_v4 = vld [vmem:[#allocation5 + $0x370] sm:$0xff]  }
 0x166   :  { %v2521_v5 = vld [vmem:[#allocation5 + $0x430] sm:$0xff]  }
 0x167   :  { %v970_v13 = vmax.f32 %v2793_v9, 0.0  ;;  %v2798_v14 = vadd.f32 %v2204_v7, %v750_v10  ;;  %v2522_v6 = vld [vmem:[#allocation5 + $0x3f0] sm:$0xff]   ;;  %v2523_v7 = vld [vmem:[#allocation5 + $0x3b8] sm:$0xff]  }
 0x168   :  { %v2525_v10 = vld [vmem:[#allocation5 + $0x438] sm:$0xff]  }
 0x169   :  { %v971_v15 = vmax.f32 %v2798_v14, 0.0  ;;  %v975_v16 = vrot.slane %v970_v13, 7  ;;  %v977_v17 = vrot.slane %v970_v13, 1  ;;  %v973_v22 = vrot.slane %v970_v13, 6 }
 0x16a   :  { %v979_v41 = vrot.slane %v970_v13, 2 }
 0x16b   :  { %v983_v19 = vrot.slane %v971_v15, 7  ;;  %v985_v21 = vrot.slane %v971_v15, 1  ;;  %v981_v23 = vrot.slane %v971_v15, 6  ;;  %v991_v30 = vpack.c.bf16 %v971_v15, %v970_v13 }
 0x16c   :  { %v987_v39 = vrot.slane %v971_v15, 2  ;;  %v2002_v15 = vld [vmem:[#allocation7 + $0x10] ss:$0 sm:$0xff] }
 0x16d   :  { %v2044_v25 = vpack.c.bf16 %v983_v19, %v975_v16  ;;  %v2050_v26 = vpack.c.bf16 %v985_v21, %v977_v17  ;;  %v2047_v28 = vpack.c.bf16 %v981_v23, %v973_v22 }
 0x16e   :  { %v2053_v43 = vpack.c.bf16 %v987_v39, %v979_v41 }
 0x16f   :  { %2045 = vmatprep.mubr.msk.bf16.mxu0 %vm2801_vm3, %v2044_v25  ;;  %2051 = vmatprep.mubr.msk.bf16.mxu1 %vm2805_vm4, %v2050_v26 }
 0x170   :  { %2048 = vmatmul.mubr.msk.bf16.vlgmr.msra.gmra.mrb[8].mxu0 %vm2809_vm5, %v2047_v28  ;;  %1312 = vmatmul.mubr.bf16.vlgmr.msra.gmra.mrb[8].mxu1 %v991_v30 }
 0x171   :  { %2321 = vmatpush3.bf16.msra.mxu0 %v2487_v29  ;;  %2336 = vmatprep.mubr.msk.bf16.mxu0 %vm2678_vm6, %v2677_v40 }
 0x172   :  { %2322 = vmatprep.subr.bf16.mxu0 %v2677_v40  ;;  %2259 = vmatpush3.bf16.msra.mxu1 %v2496_v45 }
 0x173   :  { %2260 = vmatprep.subr.bf16.mxu1 %v2499_v47 }
 0x175   :  { %2323 = vmatpush3.bf16.msra.mxu0 %v2488_v31 }
 0x176   :  { %2324 = vmatprep.subr.bf16.mxu0 %v2677_v40  ;;  %2261 = vmatpush3.bf16.msra.mxu1 %v2500_v49 }
 0x177   :  { %2262 = vmatprep.subr.bf16.mxu1 %v2503_v51 }
 0x179   :  { %2325 = vmatpush3.bf16.msra.mxu0 %v2489_v32 }
 0x17a   :  { %2326 = vmatprep.subr.bf16.mxu0 %v2677_v40  ;;  %2263 = vmatpush3.bf16.msra.mxu1 %v2504_v53 }
 0x17b   :  { %2264 = vmatprep.subr.bf16.mxu1 %v2507_v55  ;;  %v2527_v55 = vld [vmem:[#allocation5 + $0x440] sm:$0xff]  }
 0x17d   :  { %2327 = vmatpush3.bf16.msra.mxu0 %v2490_v33 }
 0x17e   :  { %2328 = vmatprep.subr.bf16.mxu0 %v2677_v40  ;;  %2265 = vmatpush3.bf16.msra.mxu1 %v2508_v57  ;;  %v2528_v57 = vld [vmem:[#allocation5 + $0x448] sm:$0xff]  }
 0x17f   :  { %2266 = vmatprep.subr.bf16.mxu1 %v2511_v59  ;;  %v2533_v59 = vld [vmem:[#allocation5 + $0x470] sm:$0xff]  }
 0x181   :  { %2329 = vmatpush3.bf16.msra.mxu0 %v2491_v34 }
 0x182   :  { %2330 = vmatprep.subr.bf16.mxu0 %v2677_v40  ;;  %2267 = vmatpush3.bf16.msra.mxu1 %v2512_v61  ;;  %v2535_v61 = vld [vmem:[#allocation5 + $0x480] sm:$0xff]  }
 0x183   :  { %2268 = vmatprep.subr.bf16.mxu1 %v2515_v63  ;;  %v2537_v63 = vld [vmem:[#allocation5 + $0x490] sm:$0xff]  }
 0x185   :  { %2331 = vmatpush3.bf16.msra.mxu0 %v2492_v35 }
 0x186   :  { %2332 = vmatprep.subr.bf16.mxu0 %v2677_v40  ;;  %2269 = vmatpush3.bf16.msra.mxu1 %v2516_v0  ;;  %v2538_v0 = vld [vmem:[#allocation5 + $0x498] sm:$0xff]  }
 0x187   :  { %2270 = vmatprep.subr.bf16.mxu1 %v2519_v3  ;;  %v2542_v3 = vld [vmem:[#allocation5 + $0x4b8] sm:$0xff]  }
 0x189   :  { %2333 = vmatpush3.bf16.msra.mxu0 %v2493_v36 }
 0x18a   :  { %2334 = vmatprep.subr.bf16.mxu0 %v2677_v40  ;;  %2271 = vmatpush3.bf16.msra.mxu1 %v2520_v4 }
 0x18b   :  { %2272 = vmatprep.subr.bf16.mxu1 %v2523_v7 }
 0x18d   :  { %2335 = vmatpush3.bf16.msra.mxu0 %v2494_v38 }
 0x18e   :  { %2280 = vmatprep.subr.bf16.mxu0 %v2497_v46  ;;  %2273 = vmatpush3.bf16.msra.mxu1 %v2524_v8 }
 0x18f   :  { %2340 = vmatprep.subr.bf16.mxu1 %v2677_v40 }
 0x190   :  { %2337 = vmatmul.mubr.msk.bf16.vlgmr.msra.gmra.mrb[12].mxu0 %vm2829_vm8, %v2053_v43 }
 0x191   :  { %2281 = vmatpush3.bf16.msra.mxu0 %v2498_v18 }
 0x192   :  { %2282 = vmatprep.subr.bf16.mxu0 %v2501_v48 }
 0x195   :  { %2283 = vmatpush3.bf16.msra.mxu0 %v2502_v50 }
 0x196   :  { %2284 = vmatprep.subr.bf16.mxu0 %v2505_v52 }
 0x199   :  { %2285 = vmatpush3.bf16.msra.mxu0 %v2506_v54 }
 0x19a   :  { %2286 = vmatprep.subr.bf16.mxu0 %v2509_v56 }
 0x19d   :  { %2287 = vmatpush3.bf16.msra.mxu0 %v2510_v58  ;;  %v2532_v58 = vld [vmem:[#allocation5 + $0x468] sm:$0xff]  }
 0x19e   :  { %2288 = vmatprep.subr.bf16.mxu0 %v2513_v60  ;;  %v2534_v60 = vld [vmem:[#allocation5 + $0x478] sm:$0xff]  }
 0x1a1   :  { %2289 = vmatpush3.bf16.msra.mxu0 %v2514_v62  ;;  %v2536_v62 = vld [vmem:[#allocation5 + $0x488] sm:$0xff]  }
 0x1a2   :  { %2290 = vmatprep.subr.bf16.mxu0 %v2517_v1  ;;  %v2539_v1 = vld [vmem:[#allocation5 + $0x4a0] sm:$0xff]  }
 0x1a5   :  { %2291 = vmatpush3.bf16.msra.mxu0 %v2518_v2  ;;  %v2541_v2 = vld [vmem:[#allocation5 + $0x4b0] sm:$0xff]  }
 0x1a6   :  { %2292 = vmatprep.subr.bf16.mxu0 %v2521_v5 }
 0x1a9   :  { %2293 = vmatpush3.bf16.msra.mxu0 %v2522_v6  ;;  %v2055_v6 = vld [vmem:[#allocation7 + $0x11] ss:$0 sm:$0xff] }
 0x1aa   :  { %2294 = vmatprep.subr.bf16.mxu0 %v2525_v10 }
 0x1ad   :  { %2295 = vmatpush3.bf16.msra.mxu0 %v2526_v11 }
 0x1ae   :  { %2360 = vmatprep.subr.bf16.mxu0 %v2677_v40 }
 0x243   :  { %v2221_v12 = vpop.f32.mrb[8].mxu0  ;;  %v2243_v13 = vpop.f32.mrb[8].mxu1 }
 0x244   :  { %v2222_v16 = vpop.f32.mrb[9].mxu0  ;;  %v2244_v17 = vpop.f32.mrb[9].mxu1 }
 0x245   :  { %v2223_v19 = vadd.f32 %v2222_v16, %v2221_v12  ;;  %v2245_v21 = vadd.f32 %v2244_v17, %v2243_v13  ;;  %v2224_v22 = vpop.f32.mrb[10].mxu0  ;;  %v2246_v23 = vpop.f32.mrb[10].mxu1 }
 0x246   :  { %v2225_v25 = vpop.f32.mrb[11].mxu0  ;;  %v2247_v26 = vpop.f32.mrb[11].mxu1 }
 0x247   :  { %v1273_v28 = vadd.f32 %v2223_v19, %v2002_v15  ;;  %v2226_v29 = vadd.f32 %v2225_v25, %v2224_v22  ;;  %v2248_v30 = vadd.f32 %v2247_v26, %v2246_v23 }
 0x249   :  { %v1276_v31 = vadd.f32 %v2226_v29, %v2002_v15  ;;  %v1314_v32 = vadd.f32 %v2245_v21, %v1273_v28 }
 0x24b   :  { %v1317_v33 = vadd.f32 %v2248_v30, %v1276_v31 }
 0x263   :  { %v1354_v34 = vpop.f32.mrb[12].mxu0 }
 0x264   :  { %v1355_v35 = vadd.f32 %v1354_v34, %v1314_v32  ;;  %v2338_v36 = vpop.f32.mrb[13].mxu0 }
 0x265   :  { %v1357_v37 = vpop.f32.mrb[14].mxu0 }
 0x266   :  { %v1361_v38 = vmax.f32 %v1355_v35, 0.0  ;;  %v1358_v39 = vadd.f32 %v1357_v37, %v1317_v33  ;;  %v2339_v41 = vpop.f32.mrb[15].mxu0  ;;  %v2108_v37 = vld [vmem:[#allocation7 + $0x12] ss:$0 sm:$0xff] }
 0x268   :  { %v1362_v43 = vmax.f32 %v1358_v39, 0.0  ;;  %v1364_v44 = vrot.slane %v1361_v38, 6  ;;  %v1370_v45 = vrot.slane %v1361_v38, 2  ;;  %v1366_v46 = vrot.slane %v1361_v38, 7  ;;  %v1867_v39 = vld [vmem:[#allocation8] sm:$0xff] }
 0x269   :  { %v1368_v18 = vrot.slane %v1361_v38, 1 }
 0x26a   :  { %v1372_v47 = vrot.slane %v1362_v43, 6  ;;  %v1378_v48 = vrot.slane %v1362_v43, 2  ;;  %v1374_v49 = vrot.slane %v1362_v43, 7  ;;  %v1376_v50 = vrot.slane %v1362_v43, 1 }
 0x26b   :  { %v1382_v51 = vpack.c.bf16 %v1362_v43, %v1361_v38 }
 0x26c   :  { %v2097_v52 = vpack.c.bf16 %v1374_v49, %v1366_v46  ;;  %v2103_v53 = vpack.c.bf16 %v1376_v50, %v1368_v18  ;;  %v2100_v54 = vpack.c.bf16 %v1372_v47, %v1364_v44  ;;  %v2106_v56 = vpack.c.bf16 %v1378_v48, %v1370_v45  ;;  %v1868_v45 = vld [vmem:[#allocation8 + $0x8] sm:$0xff] }
 0x26e   :  { %2098 = vmatprep.mubr.msk.bf16.mxu1 %vm2801_vm3, %v2097_v52  ;;  %2104 = vmatprep.mubr.msk.bf16.mxu0 %vm2805_vm4, %v2103_v53 }
 0x26f   :  { %2101 = vmatmul.mubr.msk.bf16.vlgmr.msra.gmra.mrb[12].mxu1 %vm2809_vm5, %v2100_v54  ;;  %1703 = vmatmul.mubr.bf16.vlgmr.msra.gmra.mrb[16].mxu0 %v1382_v51 }
 0x270   :  { %2341 = vmatpush3.bf16.msra.mxu1 %v2527_v55  ;;  %2356 = vmatprep.mubr.msk.bf16.mxu1 %vm2678_vm6, %v2677_v40 }
 0x271   :  { %2342 = vmatprep.subr.bf16.mxu1 %v2677_v40  ;;  %2376 = vmatprep.mubr.msk.bf16.mxu0 %vm2678_vm6, %v2677_v40 }
 0x272   :  { %2361 = vmatpush3.bf16.msra.mxu0 %v2535_v61 }
 0x273   :  { %2362 = vmatprep.subr.bf16.mxu0 %v2677_v40 }
 0x274   :  { %2343 = vmatpush3.bf16.msra.mxu1 %v2528_v57 }
 0x275   :  { %2344 = vmatprep.subr.bf16.mxu1 %v2677_v40 }
 0x276   :  { %2363 = vmatpush3.bf16.msra.mxu0 %v2536_v62 }
 0x277   :  { %2364 = vmatprep.subr.bf16.mxu0 %v2677_v40 }
 0x278   :  { %2345 = vmatpush3.bf16.msra.mxu1 %v2529_v20 }
 0x279   :  { %2346 = vmatprep.subr.bf16.mxu1 %v2677_v40 }
 0x27a   :  { %2365 = vmatpush3.bf16.msra.mxu0 %v2537_v63 }
 0x27b   :  { %2366 = vmatprep.subr.bf16.mxu0 %v2677_v40 }
 0x27c   :  { %2347 = vmatpush3.bf16.msra.mxu1 %v2530_v24 }
 0x27d   :  { %2348 = vmatprep.subr.bf16.mxu1 %v2677_v40 }
 0x27e   :  { %2367 = vmatpush3.bf16.msra.mxu0 %v2538_v0 }
 0x27f   :  { %2368 = vmatprep.subr.bf16.mxu0 %v2677_v40 }
 0x280   :  { %2349 = vmatpush3.bf16.msra.mxu1 %v2531_v27 }
 0x281   :  { %2350 = vmatprep.subr.bf16.mxu1 %v2677_v40 }
 0x282   :  { %2369 = vmatpush3.bf16.msra.mxu0 %v2539_v1 }
 0x283   :  { %2370 = vmatprep.subr.bf16.mxu0 %v2677_v40 }
 0x284   :  { %2351 = vmatpush3.bf16.msra.mxu1 %v2532_v58 }
 0x285   :  { %2352 = vmatprep.subr.bf16.mxu1 %v2677_v40 }
 0x286   :  { %2371 = vmatpush3.bf16.msra.mxu0 %v2540_v42 }
 0x287   :  { %2372 = vmatprep.subr.bf16.mxu0 %v2677_v40 }
 0x288   :  { %2353 = vmatpush3.bf16.msra.mxu1 %v2533_v59 }
 0x289   :  { %2354 = vmatprep.subr.bf16.mxu1 %v2677_v40 }
 0x28a   :  { %2373 = vmatpush3.bf16.msra.mxu0 %v2541_v2 }
 0x28b   :  { %2374 = vmatprep.subr.bf16.mxu0 %v2677_v40 }
 0x28c   :  { %2355 = vmatpush3.bf16.msra.mxu1 %v2534_v60 }
 0x28e   :  { %2375 = vmatpush3.bf16.msra.mxu0 %v2542_v3 }
 0x28f   :  { %2357 = vmatmul.mubr.msk.bf16.vlgmr.msra.gmra.mrb[16].mxu1 %vm2829_vm8, %v2106_v56 }
 0x342   :  { %v2274_v4 = vpop.f32.mrb[12].mxu1  ;;  %v2296_v5 = vpop.f32.mrb[16].mxu0 }
 0x343   :  { %v2275_v7 = vpop.f32.mrb[13].mxu1  ;;  %v2297_v8 = vpop.f32.mrb[17].mxu0 }
 0x344   :  { %v2276_v10 = vadd.f32 %v2275_v7, %v2274_v4  ;;  %v2298_v11 = vadd.f32 %v2297_v8, %v2296_v5  ;;  %v2277_v12 = vpop.f32.mrb[14].mxu1  ;;  %v2299_v13 = vpop.f32.mrb[18].mxu0 }
 0x345   :  { %v2278_v15 = vpop.f32.mrb[15].mxu1  ;;  %v2300_v16 = vpop.f32.mrb[19].mxu0 }
 0x346   :  { %v1664_v17 = vadd.f32 %v2276_v10, %v2055_v6  ;;  %v2279_v19 = vadd.f32 %v2278_v15, %v2277_v12  ;;  %v2301_v21 = vadd.f32 %v2300_v16, %v2299_v13 }
 0x348   :  { %v1667_v22 = vadd.f32 %v2279_v19, %v2055_v6  ;;  %v1705_v23 = vadd.f32 %v2298_v11, %v1664_v17 }
 0x34a   :  { %v1708_v25 = vadd.f32 %v2301_v21, %v1667_v22 }
 0x362   :  { %v1745_v40 = vpop.f32.mrb[16].mxu1 }
 0x363   :  { %v1746_v26 = vadd.f32 %v1745_v40, %v1705_v23  ;;  %v2358_v28 = vpop.f32.mrb[17].mxu1 }
 0x364   :  { %v1748_v29 = vpop.f32.mrb[18].mxu1 }
 0x365   :  { %v1752_v30 = vmul.f32 0.3, %v1746_v26  ;;  %v1749_v31 = vadd.f32 %v1748_v29, %v1708_v25  ;;  %v2359_v32 = vpop.f32.mrb[19].mxu1 }
 0x367   :  { %v1753_v33 = vmul.f32 0.3, %v1749_v31  ;;  %v1754_v34 = vadd.f32 %v1752_v30, %v2793_v9 }
 0x369   :  { %v1755_v35 = vadd.f32 %v1753_v33, %v2798_v14 }
 0x36b   :  { %v1756_v36 = vpack.c.bf16 %v1755_v35, %v1754_v34 }
 0x36d   :  { %2377 = vmatmul.mubr.bf16.vlgmr.msra.gmra.mrb[20].mxu0 %v1756_v36 }
 0x440   :  { %v1860_v38 = vpop.f32.mrb[20].mxu0 }
 0x441   :  { %v1861_v41 = vadd.f32 %v2108_v37, %v1860_v38  ;;  %v2378_v43 = vpop.f32.mrb[21].mxu0 }
 0x442   :  { %v1863_v44 = vpop.f32.mrb[22].mxu0 }
 0x443   :  { %v1864_v46 = vadd.f32 %v2108_v37, %v1863_v44  ;;  %v2379_v18 = vpop.f32.mrb[23].mxu0  ;;  %v1869_v47 = vadd.f32 %v1867_v39, %v1861_v41 }
 0x445   :  { %v1871_v48 = vmul.f32 2.0, %v1869_v47  ;;  %v1870_v49 = vadd.f32 %v1868_v45, %v1864_v46 }
 0x447   :  { %1873 = vmax.xlane.f32.xlu0 %v1871_v48  ;;  %v1872_v50 = vmul.f32 2.0, %v1870_v49 }
 0x44b   :  { %1875 = vmax.xlane.f32.xlu0 %v1872_v50 }
 0x4d4   :  { %v1874_v9 = vpop.xlane.xlu0 %1873 }
 0x4d5   :  { %v1877_v51 = vsub.f32 %v1871_v48, %v1874_v9 }
 0x4d7   :  { %v1879_v14 = vmul.f32 1.442695, %v1877_v51 }
 0x4d8   :  { %v1876_v52 = vpop.xlane.xlu0 %1875 }
 0x4d9   :  { %2543 = vpow2.f32 %v1879_v14  ;;  %v1878_v53 = vsub.f32 %v1872_v50, %v1876_v52 }
 0x4db   :  { %v1881_v54 = vmul.f32 1.442695, %v1878_v53 }
 0x4dd   :  { %2545 = vpow2.f32 %v1881_v54 }
 0x4e3   :  { %v2544_v55 = vpop.eup %2543 }
 0x4e4   :  { %1883 = vadd.xlane.f32.xlu1 %v2544_v55 }
 0x4e7   :  { %v2546_v56 = vpop.eup %2545 }
 0x4e8   :  { %1885 = vadd.xlane.f32.xlu1 %v2546_v56 }
 0x571   :  { %v1884_v57 = vpop.xlane.xlu1 %1883 }
 0x572   :  { %2547 = vrcp.f32 %v1884_v57 }
 0x575   :  { %v1886_v20 = vpop.xlane.xlu1 %1885 }
 0x576   :  { %2549 = vrcp.f32 %v1886_v20 }
 0x57c   :  { %v2548_v24 = vpop.eup %2547 }
 0x57d   :  { %v1889_v27 = vmul.f32 %v2548_v24, %v2544_v55 }
 0x57f   :  { %1891 = vst [vmem:[#allocation10] sm:$0xff] %v1889_v27 }
 0x580   :  { %v2550_v58 = vpop.eup %2549 }
 0x581   :  { %v1890_v59 = vmul.f32 %v2550_v58, %v2546_v56 }
 0x583   :  { %1892 = vst [vmem:[#allocation10 + $0x8] sm:$0xff] %v1890_v59 }
 0x584   :  { %2650 = shalt.err (!%p2647_p8)
}
 0x585   :  { %s2651_s15 = scalar_lea.hbm %s2884_s4, 256 }
 0x586   :  { %p2652_p9 = scmp.ne.s32.totalorder %s2884_s4, %s2651_s15  ;;  %p2655_p10 = scmp.lt.u32.totalorder %s2651_s15, %s2884_s4 }
 0x588   :  { %p2657_p11 = pnand %p2655_p10, %p2652_p9 }
 0x58a   :  { %2660 = shalt.err (!%p2657_p11)
}
 0x58b   :  { %1904 = dma.vmem_to_hbm [thread:$0]  %s1899_s12, 256, %s2884_s4, [#allocation4], %s2674_s0, %s2674_s0, %s2675_s24  }
 0x58c   :  { %2667 = dma.done.wait [#allocation4], 256  }
 0x58d   :  { %2668 = vsyncadd [#allocation4], 4294967040 }
 0x58e   :  { %1908 = vsyncpa [#allocation3], 1 }
 0x58f   :  { %1909 = vsyncpa [#allocation6], 1 }
 0x590   :  { %1910 = vsyncpa [#allocation9], 1 }
 0x591   :  { %1911 = vsyncpa [#allocation4], 1 }

</bundles_post_ra>
